<compile_context>
chip_gen: v7x
topology: tpu7x:2x2x1
jax: 0.10.0
libtpu: 0.0.40
codegen_flags: <defaults>
</compile_context>

<pallas_src>
import math

import jax
import jax.numpy as jnp
from jax import lax
from jax.experimental import pallas as pl
from jax.experimental.pallas import tpu as pltpu

HIGHEST = lax.Precision.HIGHEST  # reference only; the kernel uses default precision


def make_tcn_gcn_kernel(V):
    """Fused unit_gcn -> unit_tcn -> (+ residual) -> ReLU for one sample."""

    def kernel(feat_ref, wcat_ref, wr_ref, wt_ref, cvec_ref, o_ref):
        # feat_ref : (C0, T*V)  C0 = (K+1)*C_in; rows [0:C_in] are x itself,
        #                        rows [k*C_in:(k+1)*C_in] are x @ A_norm[k-1]
        # wcat_ref : (C_out, C0)        fused down-path + subset 1x1 convs (BN folded)
        # wr_ref   : (C_out, C_in)      residual 1x1 conv (BN folded)
        # wt_ref   : (KT, C_out, C_out) temporal conv taps (BN folded)
        # cvec_ref : (C_out, 2)         packed per-channel shifts [gcn | tcn+residual]
        # o_ref    : (C_out, T*V)       output block (lane-dense)
        TV = feat_ref.shape[1]
        C_in = wr_ref.shape[1]
        KT = wt_ref.shape[0]
        pad = (KT - 1) // 2

        feat = feat_ref[...]                       # (C0, TV) lane-dense
        c_gcn = cvec_ref[:, 0:1]                   # loaded once (loop invariant)
        c_out = cvec_ref[:, 1:2]

        # ---------------- unit_gcn ----------------
        # down path + all K subset 1x1 convs (BN scales folded) as ONE MXU matmul,
        # then packed biases/BN shifts + ReLU.
        g = jnp.maximum(
            jnp.dot(wcat_ref[...], feat, preferred_element_type=jnp.float32) + c_gcn,
            0.0)                                   # (C_out, TV)

        # ---------------- residual 1x1 conv (BN folded) ----------------
        # feat rows [0:C_in] are x (identity block of the extended adjacency).
        o_ref[...] = jnp.dot(wr_ref[...], feat[:C_in, :],
                             preferred_element_type=jnp.float32)

        # -------- unit_tcn: 5x1 temporal conv (pad 2, stride 1) --------
        # Each tap is a small (C_out, C_out) matmul; the (k - pad)-frame shift is a
        # static column-window accumulation (zero padding handled by the window).
        for k in range(KT):
            p = jnp.dot(wt_ref[k], g, preferred_element_type=jnp.float32)  # (C_out, TV)
            s = (k - pad) * V
            lo = max(0, -s)
            hi = TV - max(0, s)
            if hi <= lo:
                continue
            if s == 0:
                o_ref[...] += p
            else:
                o_ref[:, lo:hi] += p[:, lo + s:hi + s]

        # ---------------- biases + BN shifts + final ReLU ----------------
        o_ref[...] = jnp.maximum(o_ref[...] + c_out, 0.0)

    return kernel


def _bn_scale_shift(gamma, beta, mean, var, eps):
    scale = gamma / jnp.sqrt(var + eps)
    return scale, beta - scale * mean


def fold_params(params, eps=1e-5):
    """Adjacency L2 normalisation, BN folds and bias packing, hoisted out of the kernel."""
    K, V, _ = params["PA"].shape
    KT = params["Wt"].shape[2]

    # Column-wise L2 norm of each (V, V) adjacency (torch.norm(A, 2, dim=1)).
    A = params["PA"]
    A_norm = A / (jnp.sqrt(jnp.sum(A * A, axis=1, keepdims=True)) + 1e-4)
    # Identity-extended adjacency: block 0 reproduces x itself (consumed by the
    # folded down-path columns of wcat and by the residual conv).
    A_ext = jnp.concatenate([jnp.eye(V, dtype=A.dtype)[None], A_norm], axis=0)  # (K+1,V,V)

    sc_bn, sh_bn = _bn_scale_shift(params["bn_gamma"], params["bn_beta"],
                                   params["bn_mean"], params["bn_var"], eps)
    sc_dn, sh_dn = _bn_scale_shift(params["dn_gamma"], params["dn_beta"],
                                   params["dn_mean"], params["dn_var"], eps)
    sc_tn, sh_tn = _bn_scale_shift(params["tn_gamma"], params["tn_beta"],
                                   params["tn_mean"], params["tn_var"], eps)
    sc_rn, sh_rn = _bn_scale_shift(params["rn_gamma"], params["rn_beta"],
                                   params["rn_mean"], params["rn_var"], eps)

    wg = sc_bn[None, :, None] * params["Wg"]                  # (K, C_out, C_in)
    wd = sc_dn[:, None] * params["Wd"]                        # (C_out, C_in)
    wr = sc_rn[:, None] * params["Wr"]                        # (C_out, C_in)
    wt = sc_tn[None, :, None] * jnp.transpose(params["Wt"], (2, 0, 1))  # (KT, C_out, C_out)

    C_out, C_in = wd.shape
    # One fused GCN matrix: columns ordered [down | subset_1 | ... | subset_K],
    # matching the channel order of the wrapper-built `feat` operand.
    wcat = jnp.concatenate(
        [wd, jnp.transpose(wg, (1, 0, 2)).reshape(C_out, K * C_in)], axis=1)

    c_gcn = (sc_bn * jnp.sum(params["bg"], axis=0) + sh_bn
             + sc_dn * params["bd"] + sh_dn)
    c_out_v = sc_tn * params["bt"] + sh_tn + sc_rn * params["br"] + sh_rn
    cvec = jnp.stack([c_gcn, c_out_v], axis=1)                # (C_out, 2)

    return A_ext, wcat, wr, wt, cvec


def tcn_gcn_forward(x, params, *, eps=1e-5, vmem_limit_bytes=48 * 1024 * 1024):
    N, C_in, T, V = x.shape
    TV = T * V
    A_ext, wcat, wr, wt, cvec = fold_params(params, eps)
    C_out, C0 = wcat.shape
    KT = wt.shape[0]

    # Joint aggregation (small (V,V) contraction) evaluated once here so every
    # in-kernel operand is lane-dense with last dim T*V; channel order of `feat`
    # is [x | x@A_1 | ... | x@A_K], matching wcat's column blocks.
    feat = jnp.einsum("kvw,nctv->nkctw", A_ext, x).reshape(N, C0, TV)

    kernel = make_tcn_gcn_kernel(V)

    # One sample per grid step: the matmul N-dim is already T*V (400 here, 1600 at
    # NTU scale) which feeds the 256-wide MXU; lane-batching several samples per
    # block would require (B*T*V) % 128 == 0 (B % 8 with V=25) to keep BlockSpec
    # tiling legal and is not worth it at these sizes.
    out = pl.pallas_call(
        kernel,
        out_shape=jax.ShapeDtypeStruct((N, C_out, TV), jnp.float32),
        grid_spec=pltpu.PrefetchScalarGridSpec(
            num_scalar_prefetch=0,
            grid=(N,),
            in_specs=[
                pl.BlockSpec((None, C0, TV), lambda n: (n, 0, 0)),       # feat (per sample)
                pl.BlockSpec((C_out, C0), lambda n: (0, 0)),             # fused gcn convs
                pl.BlockSpec((C_out, C_in), lambda n: (0, 0)),           # residual conv
                pl.BlockSpec((KT, C_out, C_out), lambda n: (0, 0, 0)),   # temporal taps
                pl.BlockSpec((C_out, 2), lambda n: (0, 0)),              # packed shifts
            ],
            out_specs=pl.BlockSpec((None, C_out, TV), lambda n: (n, 0, 0)),
        ),
        compiler_params=pltpu.CompilerParams(
            dimension_semantics=("parallel",),
            vmem_limit_bytes=vmem_limit_bytes,   # well under v7x's 64 MiB physical VMEM
        ),
    )(feat, wcat, wr, wt, cvec)

    return out.reshape(N, C_out, T, V)           # free reshape back to NCTV


def ref_forward(x, params, *, eps=1e-5):
    """Pure-JAX reference mirroring the PyTorch TCN_GCN_unit forward (eval-mode BN)."""
    N, C_in, T, V = x.shape
    K = params["PA"].shape[0]
    KT = params["Wt"].shape[2]
    pad = (KT - 1) // 2

    def bn(y, pfx):
        g, b = params[pfx + "_gamma"], params[pfx + "_beta"]
        m, v = params[pfx + "_mean"], params[pfx + "_var"]
        return (g[None, :, None, None] * (y - m[None, :, None, None])
                / jnp.sqrt(v[None, :, None, None] + eps) + b[None, :, None, None])

    A = params["PA"]
    A_norm = A / (jnp.sqrt(jnp.sum(A * A, axis=1, keepdims=True)) + 1e-4)

    # unit_gcn
    y = 0.0
    for i in range(K):
        xa = jnp.einsum("nctv,vw->nctw", x, A_norm[i], precision=HIGHEST)
        y = y + (jnp.einsum("oc,nctv->notv", params["Wg"][i], xa, precision=HIGHEST)
                 + params["bg"][i][None, :, None, None])
    y = bn(y, "bn")
    d = (jnp.einsum("oc,nctv->notv", params["Wd"], x, precision=HIGHEST)
         + params["bd"][None, :, None, None])
    g_out = jnp.maximum(y + bn(d, "dn"), 0.0)

    # unit_tcn (5x1 conv, pad 2, stride 1) + BN
    gp = jnp.pad(g_out, ((0, 0), (0, 0), (pad, pad), (0, 0)))
    t = 0.0
    for k in range(KT):
        t = t + jnp.einsum("oc,nctv->notv", params["Wt"][:, :, k],
                           gp[:, :, k:k + T, :], precision=HIGHEST)
    t = bn(t + params["bt"][None, :, None, None], "tn")

    # residual branch (1x1 conv + BN)
    r = (jnp.einsum("oc,nctv->notv", params["Wr"], x, precision=HIGHEST)
         + params["br"][None, :, None, None])
    r = bn(r, "rn")

    return jnp.maximum(t + r, 0.0)


if __name__ == "__main__":
    # Small shapes consistent with the module: N batch, C_in -> C_out channels,
    # T frames, V joints (NTU skeleton), K adjacency subsets, 5-tap temporal conv.
    N, C_in, C_out, T, V = 2, 4, 8, 16, 25
    K, KT = 3, 5
    eps = 1e-5

    key = jax.random.PRNGKey(0)
    ks = jax.random.split(key, 16)

    params = {}
    params["PA"] = jax.random.uniform(ks[0], (K, V, V), jnp.float32)
    params["Wg"] = (jax.random.normal(ks[1], (K, C_out, C_in), jnp.float32)
                    * math.sqrt(2.0 / (C_out * C_in * 1 * K)))     # conv_branch_init
    params["bg"] = 0.1 * jax.random.normal(ks[2], (K, C_out), jnp.float32)
    params["Wd"] = (jax.random.normal(ks[3], (C_out, C_in), jnp.float32)
                    * math.sqrt(2.0 / C_out))                      # kaiming fan_out
    params["bd"] = 0.1 * jax.random.normal(ks[4], (C_out,), jnp.float32)
    params["Wr"] = (jax.random.normal(ks[5], (C_out, C_in), jnp.float32)
                    * math.sqrt(2.0 / C_out))
    params["br"] = 0.1 * jax.random.normal(ks[6], (C_out,), jnp.float32)
    params["Wt"] = (jax.random.normal(ks[7], (C_out, C_out, KT), jnp.float32)
                    * math.sqrt(2.0 / (C_out * KT)))
    params["bt"] = 0.1 * jax.random.normal(ks[8], (C_out,), jnp.float32)

    # BatchNorm parameters emulate a trained checkpoint (inference mode) so every
    # folded term (gamma, beta, running mean/var) is exercised by the check.
    for idx, pfx in enumerate(("bn", "dn", "tn", "rn")):
        kk = jax.random.split(ks[9 + idx], 4)
        params[pfx + "_gamma"] = jax.random.uniform(kk[0], (C_out,), jnp.float32,
                                                    minval=0.5, maxval=1.5)
        params[pfx + "_beta"] = 0.1 * jax.random.normal(kk[1], (C_out,), jnp.float32)
        params[pfx + "_mean"] = 0.1 * jax.random.normal(kk[2], (C_out,), jnp.float32)
        params[pfx + "_var"] = jax.random.uniform(kk[3], (C_out,), jnp.float32,
                                                  minval=0.5, maxval=1.5)

    x = jax.random.normal(ks[13], (N, C_in, T, V), jnp.float32)

    out = tcn_gcn_forward(x, params, eps=eps)
    out = jax.block_until_ready(out)

    ref = ref_forward(x, params, eps=eps)
    assert out.shape == (N, C_out, T, V)
    err = float(jnp.max(jnp.abs(out - ref)))
    # Kernel matmuls run at default (single-pass bf16) MXU precision with f32
    # accumulation (per the perf review), so the tolerance is looser than 1e-4;
    # observed error is ~1e-2 on these magnitudes.
    assert jnp.allclose(out, ref, rtol=5e-2, atol=5e-2), f"max abs diff {err}"

    print("KERNEL_OK")
</pallas_src>

<mosaic_0001>
module attributes {stable_mosaic.version = 11 : i64} {
  func.func @kernel(%arg0: i32, %arg1: memref<1x16x400xf32, #tpu.memory_space<vmem>>, %arg2: memref<8x16xf32, #tpu.memory_space<vmem>>, %arg3: memref<8x4xf32, #tpu.memory_space<vmem>>, %arg4: memref<5x8x8xf32, #tpu.memory_space<vmem>>, %arg5: memref<8x2xf32, #tpu.memory_space<vmem>>, %arg6: memref<1x8x400xf32, #tpu.memory_space<vmem>>) attributes {dimension_semantics = [#tpu.dimension_semantics<parallel>], iteration_bounds = array<i64: 2>, scalar_prefetch = 0 : i64, scratch_operands = 0 : i64, tpu.core_type = #tpu.core_type<tc>, window_params = [{transform_indices = @transform_0, window_bounds = array<i64: 1, 16, 400>}, {pipeline_mode = #tpu.pipeline_mode<synchronous>, transform_indices = @transform_1, window_bounds = array<i64: 8, 16>}, {pipeline_mode = #tpu.pipeline_mode<synchronous>, transform_indices = @transform_2, window_bounds = array<i64: 8, 4>}, {pipeline_mode = #tpu.pipeline_mode<synchronous>, transform_indices = @transform_3, window_bounds = array<i64: 5, 8, 8>}, {pipeline_mode = #tpu.pipeline_mode<synchronous>, transform_indices = @transform_4, window_bounds = array<i64: 8, 2>}, {transform_indices = @transform_5, window_bounds = array<i64: 1, 8, 400>}]} {
    %c0 = arith.constant 0 : index
    %c0_0 = arith.constant 0 : index
    %c0_1 = arith.constant 0 : index
    %0 = vector.load %arg1[%c0, %c0_0, %c0_1] : memref<1x16x400xf32, #tpu.memory_space<vmem>>, vector<1x16x400xf32>
    %1 = vector.shape_cast %0 : vector<1x16x400xf32> to vector<16x400xf32>
    %c0_2 = arith.constant 0 : index
    %c0_3 = arith.constant 0 : index
    %2 = vector.load %arg5[%c0_2, %c0_3] : memref<8x2xf32, #tpu.memory_space<vmem>>, vector<8x1xf32>
    %c0_4 = arith.constant 0 : index
    %c1 = arith.constant 1 : index
    %3 = vector.load %arg5[%c0_4, %c1] : memref<8x2xf32, #tpu.memory_space<vmem>>, vector<8x1xf32>
    %c0_5 = arith.constant 0 : index
    %c0_6 = arith.constant 0 : index
    %4 = vector.load %arg2[%c0_5, %c0_6] : memref<8x16xf32, #tpu.memory_space<vmem>>, vector<8x16xf32>
    %cst = arith.constant dense<0.000000e+00> : vector<8x400xf32>
    %5 = tpu.matmul %4, %1, %cst {dimension_numbers = #tpu.dot_dimension_numbers<[1], [0], [0], [1], [0, 0, 1, 1], [], []>} : vector<8x16xf32>, vector<16x400xf32>, vector<8x400xf32> -> vector<8x400xf32>
    %6 = vector.broadcast %2 : vector<8x1xf32> to vector<8x400xf32>
    %7 = arith.addf %5, %6 : vector<8x400xf32>
    %cst_7 = arith.constant 0.000000e+00 : f32
    %8 = vector.broadcast %cst_7 : f32 to vector<8x400xf32>
    %9 = arith.maximumf %7, %8 : vector<8x400xf32>
    %c0_8 = arith.constant 0 : index
    %c0_9 = arith.constant 0 : index
    %10 = vector.load %arg3[%c0_8, %c0_9] : memref<8x4xf32, #tpu.memory_space<vmem>>, vector<8x4xf32>
    %11 = vector.extract_strided_slice %1 {offsets = [0, 0], sizes = [4, 400], strides = [1, 1]} : vector<16x400xf32> to vector<4x400xf32>
    %cst_10 = arith.constant dense<0.000000e+00> : vector<8x400xf32>
    %12 = tpu.matmul %10, %11, %cst_10 {dimension_numbers = #tpu.dot_dimension_numbers<[1], [0], [0], [1], [0, 0, 1, 1], [], []>} : vector<8x4xf32>, vector<4x400xf32>, vector<8x400xf32> -> vector<8x400xf32>
    %c0_11 = arith.constant 0 : index
    %c0_12 = arith.constant 0 : index
    %c0_13 = arith.constant 0 : index
    %13 = vector.load %arg6[%c0_11, %c0_12, %c0_13] : memref<1x8x400xf32, #tpu.memory_space<vmem>>, vector<1x8x400xf32>
    %14 = vector.shape_cast %13 : vector<1x8x400xf32> to vector<8x400xf32>
    %15 = vector.shape_cast %12 : vector<8x400xf32> to vector<1x8x400xf32>
    tpu.vector_store %arg6[%c0_11, %c0_12, %c0_13], %15 {strides = array<i32>} : memref<1x8x400xf32, #tpu.memory_space<vmem>>, vector<1x8x400xf32>,
    %c0_14 = arith.constant 0 : index
    %c0_15 = arith.constant 0 : index
    %c0_16 = arith.constant 0 : index
    %16 = vector.load %arg4[%c0_14, %c0_15, %c0_16] : memref<5x8x8xf32, #tpu.memory_space<vmem>>, vector<1x8x8xf32>
    %17 = vector.shape_cast %16 : vector<1x8x8xf32> to vector<8x8xf32>
    %cst_17 = arith.constant dense<0.000000e+00> : vector<8x400xf32>
    %18 = tpu.matmul %17, %9, %cst_17 {dimension_numbers = #tpu.dot_dimension_numbers<[1], [0], [0], [1], [0, 0, 1, 1], [], []>} : vector<8x8xf32>, vector<8x400xf32>, vector<8x400xf32> -> vector<8x400xf32>
    %c0_18 = arith.constant 0 : index
    %c0_19 = arith.constant 0 : index
    %c50 = arith.constant 50 : index
    %19 = vector.load %arg6[%c0_18, %c0_19, %c50] : memref<1x8x400xf32, #tpu.memory_space<vmem>>, vector<1x8x350xf32>
    %20 = vector.shape_cast %19 : vector<1x8x350xf32> to vector<8x350xf32>
    %21 = vector.extract_strided_slice %18 {offsets = [0, 0], sizes = [8, 350], strides = [1, 1]} : vector<8x400xf32> to vector<8x350xf32>
    %22 = arith.addf %20, %21 : vector<8x350xf32>
    %c0_20 = arith.constant 0 : index
    %c0_21 = arith.constant 0 : index
    %c50_22 = arith.constant 50 : index
    %23 = vector.load %arg6[%c0_20, %c0_21, %c50_22] : memref<1x8x400xf32, #tpu.memory_space<vmem>>, vector<1x8x350xf32>
    %24 = vector.shape_cast %23 : vector<1x8x350xf32> to vector<8x350xf32>
    %25 = vector.shape_cast %22 : vector<8x350xf32> to vector<1x8x350xf32>
    tpu.vector_store %arg6[%c0_20, %c0_21, %c50_22], %25 {strides = array<i32>} : memref<1x8x400xf32, #tpu.memory_space<vmem>>, vector<1x8x350xf32>,
    %c1_23 = arith.constant 1 : index
    %c0_24 = arith.constant 0 : index
    %c0_25 = arith.constant 0 : index
    %26 = vector.load %arg4[%c1_23, %c0_24, %c0_25] : memref<5x8x8xf32, #tpu.memory_space<vmem>>, vector<1x8x8xf32>
    %27 = vector.shape_cast %26 : vector<1x8x8xf32> to vector<8x8xf32>
    %cst_26 = arith.constant dense<0.000000e+00> : vector<8x400xf32>
    %28 = tpu.matmul %27, %9, %cst_26 {dimension_numbers = #tpu.dot_dimension_numbers<[1], [0], [0], [1], [0, 0, 1, 1], [], []>} : vector<8x8xf32>, vector<8x400xf32>, vector<8x400xf32> -> vector<8x400xf32>
    %c0_27 = arith.constant 0 : index
    %c0_28 = arith.constant 0 : index
    %c25 = arith.constant 25 : index
    %29 = vector.load %arg6[%c0_27, %c0_28, %c25] : memref<1x8x400xf32, #tpu.memory_space<vmem>>, vector<1x8x375xf32>
    %30 = vector.shape_cast %29 : vector<1x8x375xf32> to vector<8x375xf32>
    %31 = vector.extract_strided_slice %28 {offsets = [0, 0], sizes = [8, 375], strides = [1, 1]} : vector<8x400xf32> to vector<8x375xf32>
    %32 = arith.addf %30, %31 : vector<8x375xf32>
    %c0_29 = arith.constant 0 : index
    %c0_30 = arith.constant 0 : index
    %c25_31 = arith.constant 25 : index
    %33 = vector.load %arg6[%c0_29, %c0_30, %c25_31] : memref<1x8x400xf32, #tpu.memory_space<vmem>>, vector<1x8x375xf32>
    %34 = vector.shape_cast %33 : vector<1x8x375xf32> to vector<8x375xf32>
    %35 = vector.shape_cast %32 : vector<8x375xf32> to vector<1x8x375xf32>
    tpu.vector_store %arg6[%c0_29, %c0_30, %c25_31], %35 {strides = array<i32>} : memref<1x8x400xf32, #tpu.memory_space<vmem>>, vector<1x8x375xf32>,
    %c2 = arith.constant 2 : index
    %c0_32 = arith.constant 0 : index
    %c0_33 = arith.constant 0 : index
    %36 = vector.load %arg4[%c2, %c0_32, %c0_33] : memref<5x8x8xf32, #tpu.memory_space<vmem>>, vector<1x8x8xf32>
    %37 = vector.shape_cast %36 : vector<1x8x8xf32> to vector<8x8xf32>
    %cst_34 = arith.constant dense<0.000000e+00> : vector<8x400xf32>
    %38 = tpu.matmul %37, %9, %cst_34 {dimension_numbers = #tpu.dot_dimension_numbers<[1], [0], [0], [1], [0, 0, 1, 1], [], []>} : vector<8x8xf32>, vector<8x400xf32>, vector<8x400xf32> -> vector<8x400xf32>
    %c0_35 = arith.constant 0 : index
    %c0_36 = arith.constant 0 : index
    %c0_37 = arith.constant 0 : index
    %39 = vector.load %arg6[%c0_35, %c0_36, %c0_37] : memref<1x8x400xf32, #tpu.memory_space<vmem>>, vector<1x8x400xf32>
    %40 = vector.shape_cast %39 : vector<1x8x400xf32> to vector<8x400xf32>
    %41 = arith.addf %40, %38 : vector<8x400xf32>
    %c0_38 = arith.constant 0 : index
    %c0_39 = arith.constant 0 : index
    %c0_40 = arith.constant 0 : index
    %42 = vector.load %arg6[%c0_38, %c0_39, %c0_40] : memref<1x8x400xf32, #tpu.memory_space<vmem>>, vector<1x8x400xf32>
    %43 = vector.shape_cast %42 : vector<1x8x400xf32> to vector<8x400xf32>
    %44 = vector.shape_cast %41 : vector<8x400xf32> to vector<1x8x400xf32>
    tpu.vector_store %arg6[%c0_38, %c0_39, %c0_40], %44 {strides = array<i32>} : memref<1x8x400xf32, #tpu.memory_space<vmem>>, vector<1x8x400xf32>,
    %c3 = arith.constant 3 : index
    %c0_41 = arith.constant 0 : index
    %c0_42 = arith.constant 0 : index
    %45 = vector.load %arg4[%c3, %c0_41, %c0_42] : memref<5x8x8xf32, #tpu.memory_space<vmem>>, vector<1x8x8xf32>
    %46 = vector.shape_cast %45 : vector<1x8x8xf32> to vector<8x8xf32>
    %cst_43 = arith.constant dense<0.000000e+00> : vector<8x400xf32>
    %47 = tpu.matmul %46, %9, %cst_43 {dimension_numbers = #tpu.dot_dimension_numbers<[1], [0], [0], [1], [0, 0, 1, 1], [], []>} : vector<8x8xf32>, vector<8x400xf32>, vector<8x400xf32> -> vector<8x400xf32>
    %c0_44 = arith.constant 0 : index
    %c0_45 = arith.constant 0 : index
    %c0_46 = arith.constant 0 : index
    %48 = vector.load %arg6[%c0_44, %c0_45, %c0_46] : memref<1x8x400xf32, #tpu.memory_space<vmem>>, vector<1x8x375xf32>
    %49 = vector.shape_cast %48 : vector<1x8x375xf32> to vector<8x375xf32>
    %50 = vector.extract_strided_slice %47 {offsets = [0, 25], sizes = [8, 375], strides = [1, 1]} : vector<8x400xf32> to vector<8x375xf32>
    %51 = arith.addf %49, %50 : vector<8x375xf32>
    %c0_47 = arith.constant 0 : index
    %c0_48 = arith.constant 0 : index
    %c0_49 = arith.constant 0 : index
    %52 = vector.load %arg6[%c0_47, %c0_48, %c0_49] : memref<1x8x400xf32, #tpu.memory_space<vmem>>, vector<1x8x375xf32>
    %53 = vector.shape_cast %52 : vector<1x8x375xf32> to vector<8x375xf32>
    %54 = vector.shape_cast %51 : vector<8x375xf32> to vector<1x8x375xf32>
    tpu.vector_store %arg6[%c0_47, %c0_48, %c0_49], %54 {strides = array<i32>} : memref<1x8x400xf32, #tpu.memory_space<vmem>>, vector<1x8x375xf32>,
    %c4 = arith.constant 4 : index
    %c0_50 = arith.constant 0 : index
    %c0_51 = arith.constant 0 : index
    %55 = vector.load %arg4[%c4, %c0_50, %c0_51] : memref<5x8x8xf32, #tpu.memory_space<vmem>>, vector<1x8x8xf32>
    %56 = vector.shape_cast %55 : vector<1x8x8xf32> to vector<8x8xf32>
    %cst_52 = arith.constant dense<0.000000e+00> : vector<8x400xf32>
    %57 = tpu.matmul %56, %9, %cst_52 {dimension_numbers = #tpu.dot_dimension_numbers<[1], [0], [0], [1], [0, 0, 1, 1], [], []>} : vector<8x8xf32>, vector<8x400xf32>, vector<8x400xf32> -> vector<8x400xf32>
    %c0_53 = arith.constant 0 : index
    %c0_54 = arith.constant 0 : index
    %c0_55 = arith.constant 0 : index
    %58 = vector.load %arg6[%c0_53, %c0_54, %c0_55] : memref<1x8x400xf32, #tpu.memory_space<vmem>>, vector<1x8x350xf32>
    %59 = vector.shape_cast %58 : vector<1x8x350xf32> to vector<8x350xf32>
    %60 = vector.extract_strided_slice %57 {offsets = [0, 50], sizes = [8, 350], strides = [1, 1]} : vector<8x400xf32> to vector<8x350xf32>
    %61 = arith.addf %59, %60 : vector<8x350xf32>
    %c0_56 = arith.constant 0 : index
    %c0_57 = arith.constant 0 : index
    %c0_58 = arith.constant 0 : index
    %62 = vector.load %arg6[%c0_56, %c0_57, %c0_58] : memref<1x8x400xf32, #tpu.memory_space<vmem>>, vector<1x8x350xf32>
    %63 = vector.shape_cast %62 : vector<1x8x350xf32> to vector<8x350xf32>
    %64 = vector.shape_cast %61 : vector<8x350xf32> to vector<1x8x350xf32>
    tpu.vector_store %arg6[%c0_56, %c0_57, %c0_58], %64 {strides = array<i32>} : memref<1x8x400xf32, #tpu.memory_space<vmem>>, vector<1x8x350xf32>,
    %c0_59 = arith.constant 0 : index
    %c0_60 = arith.constant 0 : index
    %c0_61 = arith.constant 0 : index
    %65 = vector.load %arg6[%c0_59, %c0_60, %c0_61] : memref<1x8x400xf32, #tpu.memory_space<vmem>>, vector<1x8x400xf32>
    %66 = vector.shape_cast %65 : vector<1x8x400xf32> to vector<8x400xf32>
    %67 = vector.broadcast %3 : vector<8x1xf32> to vector<8x400xf32>
    %68 = arith.addf %66, %67 : vector<8x400xf32>
    %cst_62 = arith.constant 0.000000e+00 : f32
    %69 = vector.broadcast %cst_62 : f32 to vector<8x400xf32>
    %70 = arith.maximumf %68, %69 : vector<8x400xf32>
    %c0_63 = arith.constant 0 : index
    %c0_64 = arith.constant 0 : index
    %c0_65 = arith.constant 0 : index
    %71 = vector.load %arg6[%c0_63, %c0_64, %c0_65] : memref<1x8x400xf32, #tpu.memory_space<vmem>>, vector<1x8x400xf32>
    %72 = vector.shape_cast %71 : vector<1x8x400xf32> to vector<8x400xf32>
    %73 = vector.shape_cast %70 : vector<8x400xf32> to vector<1x8x400xf32>
    tpu.vector_store %arg6[%c0_63, %c0_64, %c0_65], %73 {strides = array<i32>} : memref<1x8x400xf32, #tpu.memory_space<vmem>>, vector<1x8x400xf32>,
    return
  }
  func.func @transform_0(%arg0: i32) -> (i32, i32, i32) {
    %c0_i32 = arith.constant 0 : i32
    %c0_i32_0 = arith.constant 0 : i32
    %c0_i32_1 = arith.constant 0 : i32
    return %arg0, %c0_i32, %c0_i32_0 : i32, i32, i32
  }
  func.func @transform_1(%arg0: i32) -> (i32, i32) {
    %c0_i32 = arith.constant 0 : i32
    %c0_i32_0 = arith.constant 0 : i32
    %c0_i32_1 = arith.constant 0 : i32
    return %c0_i32, %c0_i32_0 : i32, i32
  }
  func.func @transform_2(%arg0: i32) -> (i32, i32) {
    %c0_i32 = arith.constant 0 : i32
    %c0_i32_0 = arith.constant 0 : i32
    %c0_i32_1 = arith.constant 0 : i32
    return %c0_i32, %c0_i32_0 : i32, i32
  }
  func.func @transform_3(%arg0: i32) -> (i32, i32, i32) {
    %c0_i32 = arith.constant 0 : i32
    %c0_i32_0 = arith.constant 0 : i32
    %c0_i32_1 = arith.constant 0 : i32
    %c0_i32_2 = arith.constant 0 : i32
    return %c0_i32, %c0_i32_0, %c0_i32_1 : i32, i32, i32
  }
  func.func @transform_4(%arg0: i32) -> (i32, i32) {
    %c0_i32 = arith.constant 0 : i32
    %c0_i32_0 = arith.constant 0 : i32
    %c0_i32_1 = arith.constant 0 : i32
    return %c0_i32, %c0_i32_0 : i32, i32
  }
  func.func @transform_5(%arg0: i32) -> (i32, i32, i32) {
    %c0_i32 = arith.constant 0 : i32
    %c0_i32_0 = arith.constant 0 : i32
    %c0_i32_1 = arith.constant 0 : i32
    return %arg0, %c0_i32, %c0_i32_0 : i32, i32, i32
  }
}

</mosaic_0001>

<bundles_post_ra>
// kernel: tpu_custom_call.1
= control target key start
LH: loop header
LB: loop body
LE: loop exit
PB: predicated region body
PF: predicated region fallthrough
CT: control target
= control target key end

     0   :  { %10 = vsyncpa [#allocation3], 0  ;;  %s2130_s0 = inlined_call_operand.hbm [shape: f32[2,16,400], index: 0, kind: input, shape index: {}]   ;;  %s2131_s1 = inlined_call_operand.vmem [shape: f32[8,16], index: 1, kind: input, shape index: {}]   ;;  %s2132_s2 = inlined_call_operand.vmem [shape: f32[8,4], index: 2, kind: input, shape index: {}]   ;;  %s2133_s3 = inlined_call_operand.hbm [shape: f32[5,8,8], index: 3, kind: input, shape index: {}]   ;;  %s2134_s4 = inlined_call_operand.vmem [shape: f32[8,2], index: 4, kind: input, shape index: {}]   ;;  %s2135_s5 = inlined_call_operand.hbm [shape: f32[2,8,400], index: 5, kind: output, shape index: {}]  }
   0x1   :  { %12 = vsyncpa [#allocation3 + $0x1], 0 }
   0x2   :  { %13 = vsyncpa [#allocation6], 0 }
   0x3   :  { %14 = vsyncpa [#allocation4], 0 }
   0x4   :  { %16 = vsyncpa [#allocation4 + $0x1], 0  ;;  %s1852_s18 = smov 0   ;;  %s1854_s19 = smov 0  }
   0x5   :  { %s1856_s20 = smov 0   ;;  %s1858_s21 = smov 0  }
   0x6 LB: > { %s1873_s22 = sadd.s32 4294967295, %s1806_s21   ;;  %s1563_s23 = sadd.s32 4294967294, %s1806_s21   ;;  %s1806_s21 = sphi %s1858_s21, %s2155_s21   ;;  %s1802_s20 = sphi %s1856_s20, %s2154_s20   ;;  %s1798_s19 = sphi %s1854_s19, %s2153_s19   ;;  %s1794_s18 = sphi %s1852_s18, %s2152_s18  }
   0x7   : > { %p42_p0 = scmp.ne.s32.totalorder %s1798_s19, %s1794_s18  ;;  %p2136_p1 = scmp.eq.s32.totalorder %s1873_s22, 0 }
   0x8   : > { %p156_p3 = scmp.eq.s32.totalorder %s1563_s23, 1  ;;  %p1564_p5 = scmp.ge.s32.totalorder %s1806_s21, 1 }
   0x9   : > { %p1882_p4 = por %p2136_p1, %p42_p0  ;;  %p163_p7 = scmp.lt.s32.totalorder %s1806_s21, 3 }
   0xa   : > { %p1887_p6 = por %p156_p3, %p42_p0  ;;  %s1808_s27 = smov [#allocation5]  }
   0xb   : > { %s2139_s24 = scalar_select %p1882_p4, 1, 0 }
   0xc   : > { %s2140_s25 = scalar_select %p1887_p6, 1, 0 }
   0xd   : > { %p1892_p8 = pnand %p1564_p5, %p163_p7  ;;  %s181_s28 = sshll.u32 %s1808_s27, 4  ;;  %s1896_s28 = int_to_ptr.vmem [resolvable:$true] %s181_s28 }
   0xe   : > { %s1908_s30 = sadd.s32 1, %s1806_s21   ;;  %s29_s6 = sadd.s32 1, %s1802_s20 }
   0xf   : > { %s2141_s26 = scalar_select %p1892_p8, 1, 0 }
  0x10   : > { %p1615_p9 = pneg %p1892_p8  ;;  %s26_s7 = ssub.s32 %s1806_s21, %s1908_s30 }
  0x11   : > { %s1678_s10 = scalar_lea.hbm %s2133_s3, 640 }
  0x12   : > { %p1903_p11 = pnand %p1615_p9, %p2136_p1  ;;  %p1679_p12 = scmp.ne.s32.totalorder %s2133_s3, %s1678_s10 }
  0x13   : > { %p1685_p5 = scmp.lt.u32.totalorder %s1678_s10, %s2133_s3 }
  0x14   : > { %p1680_p13 = pneg %p1903_p11 }
  0x16   : > { %p1681_p0 = pnand %p1680_p13, %p1679_p12 }
  0x18   : > { %p1682_p3 = pneg %p1681_p0 }
  0x1a   : > { %p1687_p7 = pnand %p1685_p5, %p1682_p3 }
  0x1c   : > { %1690 = shalt.err (!%p1687_p7)
}
  0x1d   : > { %s1691_s15 = scalar_lea.vmem %s1896_s28, 640  ;;  %p1699_p2 = scmp.lt.s32.totalorder %s1896_s28, %s1896_s28 }
  0x1e   : > { %p1692_p9 = scmp.ne.s32.totalorder %s1896_s28, %s1691_s15  ;;  %p1700_p6 = scmp.lt.s32.totalorder %s1691_s15, %s1691_s15 }
  0x20   : > { %p1694_p10 = pnand %p1692_p9, %p1680_p13  ;;  %p1701_p4 = por %p1700_p6, %p1699_p2 }
  0x22   : > { %p1695_p1 = pneg %p1694_p10 }
  0x24   : > { %p1702_p8 = pnand %p1701_p4, %p1695_p1 }
  0x26   : > { %1705 = shalt.err (!%p1702_p8)
}
  0x27   : > { %s1809_s16 = smov 128   ;;  %s1810_s17 = smov 8  }
  0x28   : > { %1618 = dma.hbm_to_vmem [thread:$0]  (!%p1903_p11), %s2133_s3, 640, %s1896_s28, [#allocation6], %s1809_s16, %s1809_s16, %s1810_s17  }
  0x29   : > { %p27_p2 = scmp.eq.s32.totalorder %s26_s7, 0  ;;  %p36_p1 = scmp.ne.s32.totalorder %s1802_s20, %s1798_s19 }
  0x2a   : > { %p37_p4 = scmp.eq.s32.totalorder %s1806_s21, 0  ;;  %p1628_p6 = scmp.lt.s32.totalorder %s1806_s21, 2 }
  0x2b   : > { %s1939_s8 = scalar_select %p27_p2, %s1802_s20, %s29_s6  }
  0x2c   : > { %p38_p8 = por %p37_p4, %p36_p1  ;;  %p2143_p10 = scmp.eq.s32.totalorder %s1873_s22, 1 }
  0x2d   : > { %s198_s10 = sand.u32 1, %s1802_s20   ;;  %s1597_s11 = sshll.u32 %s1806_s21, 10 }
  0x2e   : > { %p1943_p12 = por %p2143_p10, %p36_p1  ;;  %s1567_s12 = sshll.u32 %s198_s10, 6 }
  0x2f   : > { %s1952_s14 = scalar_lea.hbm %s2130_s0, %s1597_s11  ;;  %s202_s28 = scalar_lea.vmem [#allocation2], %s1567_s12 }
  0x30   : > { %s209_s6 = sshll.u32 %s202_s28, 4  ;;  %p1954_p11 = pnand %p1628_p6, %p38_p8  ;;  %s1958_s6 = int_to_ptr.vmem [resolvable:$true] %s209_s6 }
  0x31   : > { %s1960_s15 = scalar_lea.sflag [#allocation3], %s198_s10  ;;  %s1706_s16 = scalar_lea.hbm %s1952_s14, 1024 }
  0x32   : > { %p1707_p13 = scmp.ne.s32.totalorder %s1952_s14, %s1706_s16  ;;  %p1708_p0 = pneg %p1954_p11 }
  0x33   : > { %s1711_s27 = scalar_lea.hbm %s2130_s0, 2048  ;;  %p1712_p7 = scmp.lt.u32.totalorder %s1952_s14, %s2130_s0 }
  0x34   : > { %p1709_p3 = pnand %p1708_p0, %p1707_p13  ;;  %p1713_p9 = scmp.lt.u32.totalorder %s1711_s27, %s1706_s16 }
  0x35   : > { %p1715_p1 = scmp.lt.u32.totalorder %s1706_s16, %s1952_s14 }
  0x36   : > { %p1710_p5 = pneg %p1709_p3  ;;  %p1714_p2 = por %p1713_p9, %p1712_p7 }
  0x38   : > { %p1716_p4 = por %p1715_p1, %p1714_p2 }
  0x3a   : > { %p1717_p6 = pnand %p1716_p4, %p1710_p5 }
  0x3c   : > { %1720 = shalt.err (!%p1717_p6)
}
  0x3d   : > { %s1721_s10 = scalar_lea.vmem %s1958_s6, 1024  ;;  %s1811_s29 = smov [#allocation2]  }
  0x3e   : > { %p1722_p8 = scmp.ne.s32.totalorder %s1958_s6, %s1721_s10  ;;  %s1726_s13 = sshll.u32 %s1811_s29, 4  ;;  %s1727_s13 = int_to_ptr.vmem [resolvable:$false] %s1726_s13 }
  0x3f   : > { %s1728_s28 = scalar_lea.vmem %s1727_s13, 2048  ;;  %p1729_p3 = scmp.lt.s32.totalorder %s1958_s6, %s1727_s13 }
  0x40   : > { %p1724_p10 = pnand %p1722_p8, %p1708_p0  ;;  %p1730_p7 = scmp.lt.s32.totalorder %s1728_s28, %s1721_s10 }
  0x42   : > { %p1725_p13 = pneg %p1724_p10  ;;  %p1731_p9 = por %p1730_p7, %p1729_p3 }
  0x44   : > { %p1732_p2 = pnand %p1731_p9, %p1725_p13 }
  0x46   : > { %1735 = shalt.err (!%p1732_p2)
}
  0x47   : > { %s1812_s16 = smov 512   ;;  %s1813_s17 = smov 32  }
  0x48   : > { %1622 = dma.hbm_to_vmem [thread:$0]  (!%p1954_p11), %s1952_s14, 1024, %s1958_s6, %s1960_s15, %s1812_s16, %s1812_s16, %s1813_s17  }
  0x49   : > { %p2146_p0 = scmp.ne.s32.totalorder %s2141_s26, 0 }
  0x4a   : > { %s1991_s23 = sand.u32 (!%p2146_p0), 1, %s1798_s19   ;;  %p2147_p5 = scmp.ne.s32.totalorder (!%p2146_p0), %s2139_s24, 0 }
  0x4b   : > { %221 = sbr.rel (%p2146_p0) target bundleno = 701 (0x2bd), region = 40  ;;  %s1571_s27 = sshll.u32 (!%p2146_p0), %s1991_s23, 6 }
  0x4c   : > { %s224_s11 = scalar_lea.sflag (!%p2146_p0), [#allocation3], %s1991_s23  ;;  %s227_s12 = scalar_lea.vmem (!%p2146_p0), [#allocation2], %s1571_s27 }
  0x52   : > { %1781 = dma.done.wait (%p2147_p5), %s224_s11, 1024  }
  0x53   : > { %1783 = vsyncadd (%p2147_p5), %s224_s11, 4294966272  ;;  %p2148_p1 = scmp.eq.s32.totalorder %s1873_s22, 0 }
  0x55   : > { %1785 = dma.done.wait (%p2148_p1), [#allocation6], 640   ;;  %p2149_p11 = pmov %p2148_p1 }
  0x56   : > { %v1814_v0 = vmov 0.0   ;;  %v1815_v1 = vmov 0   ;;  %v259_v2 = vld [vmem:[%s227_s12 + $0x8] sm:$0xff]  ;;  %v261_v4 = vld [vmem:[%s227_s12 + $0x18] sm:$0xff]  ;;  %v258_v7 = vld [vmem:[%s227_s12] sm:$0xff]  ;;  %vm273_vm0 = vcmask 130048  }
  0x57   : > { %1787 = vsyncadd (%p2149_p11), [#allocation6], 4294966656  ;;  %341 = vmatprep.mubr.f32.mxu0 %v1814_v0  ;;  %412 = vmatprep.mubr.f32.mxu1 %v1814_v0  ;;  %v263_v3 = vld [vmem:[%s227_s12 + $0x28] sm:$0xff]  ;;  %v265_v6 = vld [vmem:[%s227_s12 + $0x38] sm:$0xff]  ;;  %vm428_vm1 = vcmask 1043456   ;;  %vm424_vm2 = vcmask 31744  }
  0x58   : > { %1675 = vset.pattern.permute.xlu0 %v1815_v1  ;;  %v1599_v5 = vpack.c.bf16 %v263_v3, %v259_v2  ;;  %v262_v8 = vld [vmem:[%s227_s12 + $0x20] sm:$0xff]  ;;  %v1603_v9 = vpack.c.bf16 %v265_v6, %v261_v4  ;;  %v260_v11 = vld [vmem:[%s227_s12 + $0x10] sm:$0xff]  ;;  %vm588_vm3 = vcmask 64512   ;;  %v763_v31 = vld [vmem:[#allocation5 + $0x8] sm:$0xff]  ;;  %s1573_s10 = sshll.u32 %s1991_s23, 5  ;;  %v1816_v39 = vmov 1  }
  0x59   : > { %v1601_v10 = vpack.c.bf16 %v262_v8, %v258_v7  ;;  %v264_v12 = vld [vmem:[%s227_s12 + $0x30] sm:$0xff]  ;;  %v2008_v14 = vld [vmem:[%s2134_s4] sm:$0xff]  ;;  %v1097_v33 = vld [vmem:[#allocation5 + $0x18] sm:$0xff]  ;;  %s2042_s29 = scalar_lea.vmem [#allocation7], %s1573_s10  ;;  %1676 = vset.pattern.permute.xlu1 %v1816_v39  ;;  %s1817_s13 = smov 50   ;;  %vm757_vm4 = vcmask 1047952  }
  0x5a   : > { %1600 = vmatprep.subr.bf16.mxu0 %v1599_v5  ;;  %v1605_v13 = vpack.c.bf16 %v264_v12, %v260_v11  ;;  %1604 = vmatprep.subr.bf16.mxu1 %v1603_v9  ;;  %v267_v15 = vld [vmem:[%s2131_s1] sm:$0xff]  ;;  %v938_v32 = vld [vmem:[#allocation5 + $0x10] sm:$0xff]  ;;  %s1818_s28 = smov 25   ;;  %s1819_s16 = smov 103   ;;  %vm746_vm5 = vcmask 408576   ;;  %vm921_vm6 = vcmask 203776  }
  0x5b   : > { %1602 = vmatpush1.bf16.msra.mxu0 %v1601_v10  ;;  %270 = vperm.xlu0 %1675, %v2008_v14   ;;  %v423_v16 = vld [vmem:[%s2132_s2] sm:$0xff]  ;;  %s1820_s17 = smov 78   ;;  %vm932_vm7 = vcmask 1047752   ;;  %vm1258_vm8 = vcmask 842752   ;;  %vm1270_vm9 = vcmask 973824   ;;  %vm1434_vm10 = vcmask 637952  }
  0x5c   : > { %1606 = vmatpush1.bf16.msra.mxu1 %v1605_v13  ;;  %1576 = vmatprep.subr.msk.mxu0 %vm428_vm1, %v259_v2  ;;  %v587_v30 = vld [vmem:[#allocation5] sm:$0xff]  ;;  %vm1446_vm11 = vcmask 769024   ;;  %s1598_s27 = sshll.u32 %s1873_s22, 9  ;;  %s1483_s11 = sshll.u32 %s2042_s29, 4  ;;  %s2083_s11 = int_to_ptr.vmem [resolvable:$true] %s1483_s11 }
  0x5d   : > { %1579 = vmatprep.subr.msk.mxu1 %vm428_vm1, %v261_v4  ;;  %v1273_v34 = vld [vmem:[#allocation5 + $0x20] sm:$0xff]  ;;  %s2081_s26 = scalar_lea.hbm %s2135_s5, %s1598_s27  ;;  %s1469_s22 = scalar_lea.sflag [#allocation4], %s1991_s23 }
  0x5e   : > { %1574 = vmatmul.mubr.msk.f32.vlgmr.msra.gmra.mrb[0].mxu0 %vm273_vm0, %v267_v15  ;;  %s1736_s14 = scalar_lea.vmem %s2083_s11, 512  ;;  %s1821_s6 = smov [#allocation7]  }
  0x5f   : > { %1575 = vmatmul.mubr.msk.f32.vlgmr.msra.gmra.mrb[0].mxu1 %vm273_vm0, %v267_v15  ;;  %505 = vmatprep.mubr.f32.mxu0 %v1814_v0  ;;  %p1737_p4 = scmp.ne.s32.totalorder %s2083_s11, %s1736_s14  ;;  %s1740_s7 = sshll.u32 %s1821_s6, 4  ;;  %s1741_s7 = int_to_ptr.vmem [resolvable:$false] %s1740_s7 }
  0x60   : > { %576 = vmatprep.mubr.f32.mxu1 %v1814_v0  ;;  %1577 = vmatpush1.msk.msra.mxu0 %vm428_vm1, %v258_v7  ;;  %s1742_s15 = scalar_lea.vmem %s1741_s7, 1024  ;;  %p1743_p10 = scmp.lt.s32.totalorder %s2083_s11, %s1741_s7 }
  0x61   : > { %1580 = vmatpush1.msk.msra.mxu1 %vm428_vm1, %v260_v11  ;;  %1677 = vset.pattern.permute.xlu0 %v1816_v39  ;;  %p1738_p6 = pnand %p1737_p4, %p1943_p12  ;;  %p1744_p13 = scmp.lt.s32.totalorder %s1742_s15, %s1736_s14 }
  0x62   : > { %1578 = vmatmul.mubr.msk.f32.vlgmr.msra.gmra.mrb[2].mxu0 %vm424_vm2, %v423_v16 }
  0x63   : > { %1581 = vmatmul.mubr.msk.f32.vlgmr.msra.gmra.mrb[2].mxu1 %vm424_vm2, %v423_v16  ;;  %656 = vmatprep.mubr.f32.mxu0 %v1814_v0  ;;  %p1739_p8 = pneg %p1738_p6  ;;  %p1745_p3 = por %p1744_p13, %p1743_p10 }
  0x64   : > { %727 = vmatprep.mubr.f32.mxu1 %v1814_v0 }
  0x65   : > { %p1746_p7 = pnand %p1745_p3, %p1739_p8 }
  0xda   : > { %v271_v17 = vpop.permute.xlu0 %270 }
 0x131   : > { %v343_v18 = vpop.f32.mrb[0].mxu0 }
 0x132   : > { %v344_v19 = vadd.f32 %v343_v18, %v271_v17  ;;  %v414_v20 = vpop.f32.mrb[0].mxu1  ;;  %v345_v21 = vpop.f32.mrb[1].mxu0 }
 0x133   : > { %v415_v22 = vadd.f32 %v414_v20, %v271_v17  ;;  %v346_v23 = vadd.f32 %v345_v21, %v271_v17  ;;  %v416_v24 = vpop.f32.mrb[1].mxu1 }
 0x134   : > { %v417_v25 = vadd.f32 %v416_v24, %v271_v17  ;;  %v419_v28 = vmax.f32 %v344_v19, 0.0 }
 0x135   : > { %v421_v26 = vmax.f32 %v415_v22, 0.0  ;;  %v420_v27 = vmax.f32 %v346_v23, 0.0  ;;  %v507_v35 = vpop.f32.mrb[2].mxu0 }
 0x136   : > { %v422_v29 = vmax.f32 %v417_v25, 0.0  ;;  %583 = vst [vmem:[%s2042_s29] sm:$0xff] %v507_v35  ;;  %v509_v36 = vpop.f32.mrb[3].mxu0  ;;  %v578_v37 = vpop.f32.mrb[2].mxu1 }
 0x137   : > { %592 = vmatprep.subr.mxu0 %v420_v27  ;;  %v580_v38 = vpop.f32.mrb[3].mxu1 }
 0x138   : > { %663 = vmatprep.subr.mxu1 %v422_v29  ;;  %593 = vmatpush1.msra.mxu0 %v419_v28  ;;  %586 = vst.msk [vmem:[%s2042_s29 + $0x18] sm:$0xff] %vm273_vm0, %v580_v38 }
 0x139   : > { %664 = vmatpush1.msra.mxu1 %v421_v26  ;;  %1582 = vmatmul.mubr.msk.f32.vlgmr.msra.gmra.mrb[4].mxu0 %vm588_vm3, %v587_v30 }
 0x13a   : > { %1583 = vmatmul.mubr.msk.f32.vlgmr.msra.gmra.mrb[4].mxu1 %vm588_vm3, %v587_v30  ;;  %767 = vmatprep.subr.mxu0 %v420_v27 }
 0x13b   : > { %838 = vmatprep.subr.mxu1 %v422_v29  ;;  %768 = vmatpush1.msra.mxu0 %v419_v28 }
 0x13c   : > { %839 = vmatpush1.msra.mxu1 %v421_v26  ;;  %942 = vmatprep.subr.mxu0 %v420_v27 }
 0x13d   : > { %1013 = vmatprep.subr.mxu1 %v422_v29  ;;  %831 = vmatprep.mubr.f32.mxu0 %v1814_v0 }
 0x13e   : > { %902 = vmatprep.mubr.f32.mxu1 %v1814_v0  ;;  %1584 = vmatmul.mubr.msk.f32.vlgmr.msra.gmra.mrb[6].mxu0 %vm588_vm3, %v763_v31 }
 0x13f   : > { %1585 = vmatmul.mubr.msk.f32.vlgmr.msra.gmra.mrb[6].mxu1 %vm588_vm3, %v763_v31  ;;  %943 = vmatpush1.msra.mxu0 %v419_v28  ;;  %v736_v63 = vld [vmem:[%s2042_s29 + $0x18] sm:$0xff] }
 0x140   : > { %1014 = vmatpush1.msra.mxu1 %v421_v26  ;;  %1101 = vmatprep.subr.mxu0 %v420_v27 }
 0x141   : > { %1172 = vmatprep.subr.mxu1 %v422_v29  ;;  %1006 = vmatprep.mubr.f32.mxu0 %v1814_v0 }
 0x142   : > { %1077 = vmatprep.mubr.f32.mxu1 %v1814_v0  ;;  %1586 = vmatmul.mubr.msk.f32.vlgmr.msra.gmra.mrb[8].mxu0 %vm588_vm3, %v938_v32 }
 0x143   : > { %1587 = vmatmul.mubr.msk.f32.vlgmr.msra.gmra.mrb[8].mxu1 %vm588_vm3, %v938_v32  ;;  %1102 = vmatpush1.msra.mxu0 %v419_v28 }
 0x144   : > { %1173 = vmatpush1.msra.mxu1 %v421_v26  ;;  %1277 = vmatprep.subr.mxu0 %v420_v27 }
 0x145   : > { %1348 = vmatprep.subr.mxu1 %v422_v29  ;;  %1165 = vmatprep.mubr.f32.mxu0 %v1814_v0 }
 0x146   : > { %1236 = vmatprep.mubr.f32.mxu1 %v1814_v0  ;;  %1588 = vmatmul.mubr.msk.f32.vlgmr.msra.gmra.mrb[10].mxu0 %vm588_vm3, %v1097_v33 }
 0x147   : > { %1589 = vmatmul.mubr.msk.f32.vlgmr.msra.gmra.mrb[10].mxu1 %vm588_vm3, %v1097_v33  ;;  %1278 = vmatpush1.msra.mxu0 %v419_v28 }
 0x148   : > { %1349 = vmatpush1.msra.mxu1 %v421_v26  ;;  %1341 = vmatprep.mubr.f32.mxu0 %v1814_v0 }
 0x149   : > { %1412 = vmatprep.mubr.f32.mxu1 %v1814_v0 }
 0x14a   : > { %1590 = vmatmul.mubr.msk.f32.vlgmr.msra.gmra.mrb[12].mxu0 %vm588_vm3, %v1273_v34 }
 0x14b   : > { %1591 = vmatmul.mubr.msk.f32.vlgmr.msra.gmra.mrb[12].mxu1 %vm588_vm3, %v1273_v34 }
 0x20c   : > { %v658_v40 = vpop.f32.mrb[4].mxu0 }
 0x20d   : > { %740 = vrot.lane.b32.xlu0 %v658_v40, %s1817_s13  ;;  %v660_v41 = vpop.f32.mrb[5].mxu0  ;;  %v729_v42 = vpop.f32.mrb[4].mxu1 }
 0x20e   : > { %742 = vrot.lane.b32.xlu1 %v660_v41, %s1817_s13  ;;  %v731_v43 = vpop.f32.mrb[5].mxu1 }
 0x211   : > { %v833_v44 = vpop.f32.mrb[6].mxu0 }
 0x212   : > { %744 = vrot.lane.b32.xlu1 %v729_v42, %s1817_s13  ;;  %v835_v45 = vpop.f32.mrb[7].mxu0  ;;  %915 = vrot.lane.b32.xlu0 %v833_v44, %s1818_s28  ;;  %v904_v46 = vpop.f32.mrb[6].mxu1 }
 0x213   : > { %v906_v47 = vpop.f32.mrb[7].mxu1 }
 0x215   : > { %v2047_v48 = vpop.f32.mrb[8].mxu0 }
 0x216   : > { %917 = vrot.lane.b32.xlu1 %v835_v45, %s1818_s28  ;;  %v1010_v49 = vpop.f32.mrb[9].mxu0  ;;  %v1079_v50 = vpop.f32.mrb[8].mxu1  ;;  %919 = vrot.lane.b32.xlu0 %v904_v46, %s1818_s28 }
 0x217   : > { %v2049_v51 = vpop.f32.mrb[9].mxu1 }
 0x219   : > { %v1167_v52 = vpop.f32.mrb[10].mxu0 }
 0x21a   : > { %1250 = vrot.lane.b32.xlu1 %v1167_v52, %s1819_s16  ;;  %v1238_v53 = vpop.f32.mrb[10].mxu1  ;;  %v1169_v54 = vpop.f32.mrb[11].mxu0 }
 0x21b   : > { %v1240_v55 = vpop.f32.mrb[11].mxu1  ;;  %1252 = vrot.lane.b32.xlu0 %v1169_v54, %s1819_s16 }
 0x21d   : > { %v1343_v56 = vpop.f32.mrb[12].mxu0 }
 0x21e   : > { %1254 = vrot.lane.b32.xlu1 %v1238_v53, %s1819_s16  ;;  %v1414_v57 = vpop.f32.mrb[12].mxu1  ;;  %v1345_v58 = vpop.f32.mrb[13].mxu0 }
 0x21f   : > { %1256 = vrot.lane.b32.xlu0 %v1240_v55, %s1819_s16  ;;  %v1416_v59 = vpop.f32.mrb[13].mxu1 }
 0x222   : > { %1426 = vrot.lane.b32.xlu1 %v1343_v56, %s1820_s17 }
 0x223   : > { %1428 = vrot.lane.b32.xlu0 %v1345_v58, %s1820_s17 }
 0x226   : > { %1430 = vrot.lane.b32.xlu1 %v1414_v57, %s1820_s17 }
 0x227   : > { %1432 = vrot.lane.b32.xlu0 %v1416_v59, %s1820_s17 }
 0x22a   : > { %1453 = vperm.xlu1 %1676, %v2008_v14  }
 0x27f   : > { %v741_v60 = vpop.permute.xlu0 %740 }
 0x280   : > { %v753_v61 = vadd.f32 %v741_v60, %v507_v35  ;;  %v743_v62 = vpop.permute.xlu1 %742 }
 0x281   : > { %v747_v2 = vsel %vm746_vm5, %v741_v60, %v743_v62 }
 0x282   : > { %758 = vst.msk [vmem:[%s2042_s29] sm:$0xff] %vm757_vm4, %v753_v61  ;;  %v754_v5 = vadd.f32 %v747_v2, %v509_v36 }
 0x284   : > { %v745_v0 = vpop.permute.xlu1 %744  ;;  %v916_v1 = vpop.permute.xlu0 %915 }
 0x285   : > { %v748_v3 = vsel %vm746_vm5, %v743_v62, %v745_v0  ;;  %v756_v4 = vadd.f32 %v745_v0, %v736_v63 }
 0x286   : > { %v755_v6 = vadd.f32 %v748_v3, %v578_v37 }
 0x287   : > { %761 = vst.msk [vmem:[%s2042_s29 + $0x18] sm:$0xff] %vm273_vm0, %v756_v4 }
 0x288   : > { %v918_v7 = vpop.permute.xlu1 %917  ;;  %v920_v8 = vpop.permute.xlu0 %919 }
 0x289   : > { %v908_v9 = vld [vmem:[%s2042_s29] sm:$0xff]  ;;  %v922_v10 = vsel %vm921_vm6, %v916_v1, %v918_v7  ;;  %v923_v11 = vsel %vm921_vm6, %v918_v7, %v920_v8 }
 0x28a   : > { %v928_v12 = vadd.f32 %v916_v1, %v908_v9  ;;  %v929_v13 = vadd.f32 %v922_v10, %v754_v5  ;;  %v930_v14 = vadd.f32 %v923_v11, %v755_v6 }
 0x28c   : > { %933 = vst.msk [vmem:[%s2042_s29] sm:$0xff] %vm932_vm7, %v928_v12  ;;  %v1090_v15 = vadd.f32 %v1079_v50, %v930_v14  ;;  %v1251_v16 = vpop.permute.xlu1 %1250  ;;  %v1089_v17 = vadd.f32 %v1010_v49, %v929_v13 }
 0x28d   : > { %v1253_v18 = vpop.permute.xlu0 %1252 }
 0x28e   : > { %v911_v19 = vld [vmem:[%s2042_s29 + $0x18] sm:$0xff]  ;;  %1094 = vst [vmem:[%s2042_s29 + $0x10] sm:$0xff] %v1090_v15  ;;  %v1259_v36 = vsel %vm1258_vm8, %v1251_v16, %v1253_v18 }
 0x28f   : > { %v931_v20 = vadd.f32 %v920_v8, %v911_v19 }
 0x290   : > { %v1255_v21 = vpop.permute.xlu1 %1254 }
 0x291   : > { %936 = vst.msk [vmem:[%s2042_s29 + $0x18] sm:$0xff] %vm273_vm0, %v931_v20  ;;  %v1257_v22 = vpop.permute.xlu0 %1256  ;;  %v1260_v37 = vsel %vm1258_vm8, %v1253_v18, %v1255_v21 }
 0x292   : > { %v1261_v23 = vsel %vm1258_vm8, %v1255_v21, %v1257_v22  ;;  %v1266_v40 = vadd.f32 %v1260_v37, %v1089_v17 }
 0x293   : > { %v1267_v24 = vadd.f32 %v1261_v23, %v1090_v15  ;;  %v1084_v33 = vld [vmem:[%s2042_s29] sm:$0xff] }
 0x294   : > { %v1427_v25 = vpop.permute.xlu1 %1426  ;;  %v1088_v35 = vadd.f32 %v1084_v33, %v2047_v48 }
 0x295   : > { %1271 = vst.msk [vmem:[%s2042_s29 + $0x10] sm:$0xff] %vm1270_vm9, %v1267_v24  ;;  %v1429_v26 = vpop.permute.xlu0 %1428 }
 0x296   : > { %v1265_v38 = vadd.f32 %v1259_v36, %v1088_v35  ;;  %v1435_v41 = vsel %vm1434_vm10, %v1427_v25, %v1429_v26 }
 0x298   : > { %v1087_v27 = vld [vmem:[%s2042_s29 + $0x18] sm:$0xff]  ;;  %v1431_v29 = vpop.permute.xlu1 %1430  ;;  %v1441_v42 = vadd.f32 %v1435_v41, %v1265_v38 }
 0x299   : > { %v1091_v28 = vadd.f32 %v1087_v27, %v2049_v51  ;;  %v1433_v30 = vpop.permute.xlu0 %1432  ;;  %v1436_v39 = vsel %vm1434_vm10, %v1429_v26, %v1431_v29 }
 0x29a   : > { %v1437_v32 = vsel %vm1434_vm10, %v1431_v29, %v1433_v30  ;;  %v1442_v43 = vadd.f32 %v1436_v39, %v1266_v40 }
 0x29b   : > { %1095 = vst.msk [vmem:[%s2042_s29 + $0x18] sm:$0xff] %vm273_vm0, %v1091_v28 }
 0x29c   : > { %v1421_v31 = vld [vmem:[%s2042_s29 + $0x10] sm:$0xff] }
 0x29d   : > { %v1443_v34 = vadd.f32 %v1437_v32, %v1421_v31 }
 0x29f   : > { %1447 = vst.msk [vmem:[%s2042_s29 + $0x10] sm:$0xff] %vm1446_vm11, %v1443_v34 }
 0x2a2   : > { %v1451_v44 = vld [vmem:[%s2042_s29 + $0x18] sm:$0xff] }
 0x2a6   : > { %v1450_v46 = vld [vmem:[%s2042_s29 + $0x10] sm:$0xff] }
 0x2a9   : > { %v1454_v45 = vpop.permute.xlu1 %1453 }
 0x2aa   : > { %v1456_v47 = vadd.f32 %v1454_v45, %v1441_v42  ;;  %v1457_v48 = vadd.f32 %v1454_v45, %v1442_v43  ;;  %v1459_v49 = vadd.f32 %v1454_v45, %v1451_v44  ;;  %v1458_v50 = vadd.f32 %v1454_v45, %v1450_v46 }
 0x2ac   : > { %v1460_v51 = vmax.f32 %v1456_v47, 0.0  ;;  %v1461_v52 = vmax.f32 %v1457_v48, 0.0  ;;  %v1463_v53 = vmax.f32 %v1459_v49, 0.0  ;;  %v1462_v54 = vmax.f32 %v1458_v50, 0.0 }
 0x2ae   : > { %1464 = vst [vmem:[%s2042_s29] sm:$0xff] %v1460_v51  ;;  %1465 = vst [vmem:[%s2042_s29 + $0x8] sm:$0xff] %v1461_v52 }
 0x2af   : > { %1467 = vst.msk [vmem:[%s2042_s29 + $0x18] sm:$0xff] %vm273_vm0, %v1463_v53  ;;  %1466 = vst [vmem:[%s2042_s29 + $0x10] sm:$0xff] %v1462_v54 }
 0x2b0   : > { %1749 = shalt.err (!%p1746_p7)
}
 0x2b1   : > { %s1750_s23 = scalar_lea.hbm %s2081_s26, 512  ;;  %s1754_s13 = scalar_lea.hbm %s2135_s5, 1024 }
 0x2b2   : > { %p1751_p9 = scmp.ne.s32.totalorder %s2081_s26, %s1750_s23  ;;  %p1755_p5 = scmp.lt.u32.totalorder %s2081_s26, %s2135_s5 }
 0x2b3   : > { %p1756_p1 = scmp.lt.u32.totalorder %s1754_s13, %s1750_s23  ;;  %p1758_p4 = scmp.lt.u32.totalorder %s1750_s23, %s2081_s26 }
 0x2b4   : > { %p1752_p2 = pnand %p1751_p9, %p1943_p12 }
 0x2b5   : > { %p1757_p11 = por %p1756_p1, %p1755_p5 }
 0x2b6   : > { %p1753_p0 = pneg %p1752_p2 }
 0x2b7   : > { %p1759_p6 = por %p1758_p4, %p1757_p11 }
 0x2b9   : > { %p1760_p8 = pnand %p1759_p6, %p1753_p0 }
 0x2bb   : > { %1763 = shalt.err (!%p1760_p8)
}
 0x2bc   : > { %1613 = dma.vmem_to_hbm [thread:$0]  (%p1943_p12), %s2083_s11, 512, %s2081_s26, %s1469_s22  }
 0x2bd PF: > { %s1495_s17 = sand.u32 1, %s1794_s18   ;;  %p2150_p10 = scmp.ne.s32.totalorder %s2140_s25, 0 }
 0x2be   : > { %p2151_p13 = scmp.ge.s32.totalorder %s1806_s21, 2  ;;  %s1496_s27 = scalar_lea.sflag [#allocation4], %s1495_s17 }
 0x2c0   : > { %p1624_p3 = pnand %p2151_p13, %p2150_p10 }
 0x2c2   : > { %1789 = dma.done.wait (!%p1624_p3), %s1496_s27, 512  }
 0x2c3   : > { %1791 = vsyncadd (!%p1624_p3), %s1496_s27, 4294966784  ;;  %p19_p7 = scmp.ge.s32.totalorder %s1908_s30, 4   ;;  %s2152_s18 = smov %s1798_s19 }
 0x2c4   : > { %s2153_s19 = smov %s1802_s20  ;;  %s2154_s20 = smov %s1939_s8 }
 0x2c5   : > { %s2155_s21 = smov %s1908_s30  ;;  %21 = sbr.rel (!%p19_p7) target bundleno = 6 (0x6), region = 93 }
 0x2cc   :  { %1501 = vsyncpa [#allocation3], 1 }
 0x2cd   :  { %1503 = vsyncpa [#allocation3 + $0x1], 1 }
 0x2ce   :  { %1504 = vsyncpa [#allocation6], 1 }
 0x2cf   :  { %1505 = vsyncpa [#allocation4], 1 }
 0x2d0   :  { %1507 = vsyncpa [#allocation4 + $0x1], 1 }

</bundles_post_ra>
